<compile_context>
chip_gen: v7x
topology: tpu7x:2x2x1
jax: 0.10.0
libtpu: 0.0.40
codegen_flags: <defaults>
</compile_context>

<pallas_src>
import math
import functools

import jax
import jax.numpy as jnp
from jax.experimental import pallas as pl
from jax.experimental.pallas import tpu as pltpu


_VMEM_BLOCK_BUDGET = 24 * 1024 * 1024   # sizing target for double-buffered blocks + temps
_VMEM_LIMIT_BYTES = 48 * 1024 * 1024    # scoped VMEM limit (raises v5e's 16 MiB default,
                                        # stays under v7x's 64 MiB physical VMEM)


def _sdpa_kernel(q_ref, k_ref, v_ref, cmask_ref, out_ref, attn_ref, *, inv_temperature):
    q = q_ref[...]                               # (TB, L, D)  f32
    k = k_ref[...]                               # (TB, L, D)  f32
    v = v_ref[...]                               # (TB, L, Dv) f32
    cm = cmask_ref[...].astype(jnp.float32)      # (TB, L, L)  combined {0,1} mask

    # scores = q @ k^T / temperature  — batched MXU matmul, contraction on the last
    # dims directly (no materialized transpose of k).
    scores = jnp.einsum('bld,bmd->blm', q, k,
                        preferred_element_type=jnp.float32) * inv_temperature

    # softmax(scores*cm)*cm / (sum + eps)  ==  exp(masked - max)*cm / (sum + eps)
    masked = scores * cm
    mx = jnp.max(masked, axis=-1, keepdims=True)
    a = jnp.exp(masked - mx) * cm
    denom = jnp.sum(a, axis=-1, keepdims=True) + 1e-13
    # Exact reciprocal keeps parity with the f32 reference within 1e-5;
    # pl.reciprocal(denom, approx=True) moves it fully onto the EUP at ~1e-4 rel. error.
    a = a * pl.reciprocal(denom)

    attn_ref[...] = a.astype(attn_ref.dtype)
    out_ref[...] = jnp.einsum('blm,bmd->bld', a, v,
                              preferred_element_type=jnp.float32).astype(out_ref.dtype)


def _pick_batch_tile(B, L, D, Dv):
    """Largest divisor of B whose double-buffered blocks fit the VMEM budget."""
    # Double-buffered per-batch-element block bytes: q, k, v, int8 mask, out, attn.
    per_b = 2 * (L * D * 4 + L * D * 4 + L * Dv * 4 + L * L * 1 + L * Dv * 4 + L * L * 4)
    # Rough allowance for in-kernel f32 intermediates (scores / exp / attn).
    per_b += 4 * L * L * 4
    tb = max(1, _VMEM_BLOCK_BUDGET // per_b)
    if B >= 2:
        # Keep at least 2 grid steps so both v7x TensorCores get work
        # (dimension_semantics=("parallel",) shards the grid across cores).
        tb = min(tb, max(1, B // 2))
    tb = min(tb, B)
    best = 1
    for d in range(1, tb + 1):
        if B % d == 0:
            best = d
    return best


def scaled_dot_product_attention(q, k, v, diag_mask, mask, temperature):
    B, L, D = q.shape
    Dv = v.shape[-1]

    # combined_mask = 1 - ((1 - diag_mask + mask) > 0), computed once by XLA and shipped
    # to the kernel as a single int8 {0,1} stream (8x less mask HBM traffic than the two
    # original f32 masks).
    diag_f = diag_mask.astype(jnp.float32)
    mask_f = jnp.zeros_like(diag_f) if mask is None else mask.astype(jnp.float32)
    combined = 1.0 - ((1.0 - diag_f + mask_f) > 0.0).astype(jnp.float32)
    combined_i8 = combined.astype(jnp.int8)

    tb = _pick_batch_tile(B, L, D, Dv)
    grid = (B // tb,)

    kernel = functools.partial(_sdpa_kernel, inv_temperature=1.0 / float(temperature))

    out_shapes = (
        jax.ShapeDtypeStruct((B, L, Dv), q.dtype),     # output
        jax.ShapeDtypeStruct((B, L, L), jnp.float32),  # attn
    )

    grid_spec = pltpu.PrefetchScalarGridSpec(
        num_scalar_prefetch=0,
        grid=grid,
        in_specs=[
            pl.BlockSpec((tb, L, D), lambda b: (b, 0, 0)),    # q
            pl.BlockSpec((tb, L, D), lambda b: (b, 0, 0)),    # k
            pl.BlockSpec((tb, L, Dv), lambda b: (b, 0, 0)),   # v
            pl.BlockSpec((tb, L, L), lambda b: (b, 0, 0)),    # combined mask (int8)
        ],
        out_specs=[
            pl.BlockSpec((tb, L, Dv), lambda b: (b, 0, 0)),   # output
            pl.BlockSpec((tb, L, L), lambda b: (b, 0, 0)),    # attn
        ],
    )

    return pl.pallas_call(
        kernel,
        out_shape=out_shapes,
        grid_spec=grid_spec,
        compiler_params=pltpu.CompilerParams(
            dimension_semantics=("parallel",),
            vmem_limit_bytes=_VMEM_LIMIT_BYTES,
        ),
    )(q, k, v, combined_i8)


def _reference(q, k, v, diag_mask, mask, temperature):
    attn = jnp.einsum('bld,bmd->blm', q, k) / temperature
    combined = 1.0 - ((1.0 - diag_mask + mask) > 0.0).astype(jnp.float32)
    attn = jax.nn.softmax(attn * combined, axis=-1)
    attn = attn * combined
    attn = attn / (jnp.sum(attn, axis=-1, keepdims=True) + 1e-13)
    out = jnp.einsum('blm,bmd->bld', attn, v)
    return out, attn


if __name__ == "__main__":
    configs = [
        (2, 8, 32, 32),    # (B, L, D, Dv): toy shape matching the module usage
        (16, 8, 32, 32),   # exercises batch tiling (TB > 1, multiple grid steps)
        (6, 10, 16, 24),   # Dv != D, L not a multiple of 8
    ]
    key = jax.random.PRNGKey(0)
    for (B, L, D, Dv) in configs:
        key, kq, kk, kv, km = jax.random.split(key, 5)
        q = jax.random.normal(kq, (B, L, D), dtype=jnp.float32)
        k = jax.random.normal(kk, (B, L, D), dtype=jnp.float32)
        v = jax.random.normal(kv, (B, L, Dv), dtype=jnp.float32)
        temperature = math.sqrt(D)

        # diag_mask: ones minus the identity (as built in MultiHeadAttention)
        diag_mask = jnp.broadcast_to(1.0 - jnp.eye(L, dtype=jnp.float32), (B, L, L))
        # mask: binary padding-style key mask (as from get_attn_key_pad_mask)
        mask = (jax.random.uniform(km, (B, L, L)) > 0.7).astype(jnp.float32)

        out, attn = scaled_dot_product_attention(q, k, v, diag_mask, mask, temperature)
        out = jax.block_until_ready(out)
        attn = jax.block_until_ready(attn)

        ref_out, ref_attn = _reference(q, k, v, diag_mask, mask, temperature)
        assert jnp.allclose(out, ref_out, atol=1e-5, rtol=1e-5), (B, L, D, Dv)
        assert jnp.allclose(attn, ref_attn, atol=1e-5, rtol=1e-5), (B, L, D, Dv)

    print("KERNEL_OK")
</pallas_src>

<mosaic_0001>
module attributes {stable_mosaic.version = 11 : i64} {
  func.func @_sdpa_kernel(%arg0: i32, %arg1: memref<1x8x32xf32, #tpu.memory_space<vmem>>, %arg2: memref<1x8x32xf32, #tpu.memory_space<vmem>>, %arg3: memref<1x8x32xf32, #tpu.memory_space<vmem>>, %arg4: memref<1x8x8xi8, #tpu.memory_space<vmem>>, %arg5: memref<1x8x32xf32, #tpu.memory_space<vmem>>, %arg6: memref<1x8x8xf32, #tpu.memory_space<vmem>>) attributes {dimension_semantics = [#tpu.dimension_semantics<parallel>], iteration_bounds = array<i64: 2>, scalar_prefetch = 0 : i64, scratch_operands = 0 : i64, tpu.core_type = #tpu.core_type<tc>, window_params = [{transform_indices = @transform_0, window_bounds = array<i64: 1, 8, 32>}, {transform_indices = @transform_1, window_bounds = array<i64: 1, 8, 32>}, {transform_indices = @transform_2, window_bounds = array<i64: 1, 8, 32>}, {transform_indices = @transform_3, window_bounds = array<i64: 1, 8, 8>}, {transform_indices = @transform_4, window_bounds = array<i64: 1, 8, 32>}, {transform_indices = @transform_5, window_bounds = array<i64: 1, 8, 8>}]} {
    %c0 = arith.constant 0 : index
    %c0_0 = arith.constant 0 : index
    %c0_1 = arith.constant 0 : index
    %0 = vector.load %arg1[%c0, %c0_0, %c0_1] : memref<1x8x32xf32, #tpu.memory_space<vmem>>, vector<1x8x32xf32>
    %c0_2 = arith.constant 0 : index
    %c0_3 = arith.constant 0 : index
    %c0_4 = arith.constant 0 : index
    %1 = vector.load %arg2[%c0_2, %c0_3, %c0_4] : memref<1x8x32xf32, #tpu.memory_space<vmem>>, vector<1x8x32xf32>
    %c0_5 = arith.constant 0 : index
    %c0_6 = arith.constant 0 : index
    %c0_7 = arith.constant 0 : index
    %2 = vector.load %arg3[%c0_5, %c0_6, %c0_7] : memref<1x8x32xf32, #tpu.memory_space<vmem>>, vector<1x8x32xf32>
    %c0_8 = arith.constant 0 : index
    %c0_9 = arith.constant 0 : index
    %c0_10 = arith.constant 0 : index
    %3 = vector.load %arg4[%c0_8, %c0_9, %c0_10] : memref<1x8x8xi8, #tpu.memory_space<vmem>>, vector<1x8x8xi8>
    %4 = arith.sitofp %3 : vector<1x8x8xi8> to vector<1x8x8xf32>
    "tpu.trace_start"() <{level = 10 : i32, message = "bld,bmd->blm"}> : () -> ()
    %cst = arith.constant dense<0.000000e+00> : vector<1x8x8xf32>
    %5 = tpu.matmul %0, %1, %cst {dimension_numbers = #tpu.dot_dimension_numbers<[2], [2], [1], [1], [0, 0, 0, 1, 1, 1], [0], [0]>} : vector<1x8x32xf32>, vector<1x8x32xf32>, vector<1x8x8xf32> -> vector<1x8x8xf32>
    "tpu.trace_stop"() : () -> ()
    %cst_11 = arith.constant 0.176776692 : f32
    %6 = vector.broadcast %cst_11 : f32 to vector<1x8x8xf32>
    %7 = arith.mulf %5, %6 : vector<1x8x8xf32>
    %8 = arith.mulf %7, %4 : vector<1x8x8xf32>
    %cst_12 = arith.constant dense<0xFF800000> : vector<1x8xf32>
    %9 = vector.multi_reduction <maximumf>, %8, %cst_12 [2] : vector<1x8x8xf32> to vector<1x8xf32>
    %10 = vector.shape_cast %9 : vector<1x8xf32> to vector<1x8x1xf32>
    %11 = vector.broadcast %10 : vector<1x8x1xf32> to vector<1x8x8xf32>
    %12 = arith.subf %8, %11 : vector<1x8x8xf32>
    %13 = math.exp %12 : vector<1x8x8xf32>
    %14 = arith.mulf %13, %4 : vector<1x8x8xf32>
    %cst_13 = arith.constant dense<0.000000e+00> : vector<1x8xf32>
    %15 = vector.multi_reduction <add>, %14, %cst_13 [2] : vector<1x8x8xf32> to vector<1x8xf32>
    %16 = vector.shape_cast %15 : vector<1x8xf32> to vector<1x8x1xf32>
    %cst_14 = arith.constant 9.99999982E-14 : f32
    %17 = vector.broadcast %cst_14 : f32 to vector<1x8x1xf32>
    %18 = arith.addf %16, %17 : vector<1x8x1xf32>
    %19 = tpu.reciprocal %18 : vector<1x8x1xf32> -> vector<1x8x1xf32>
    %20 = vector.broadcast %19 : vector<1x8x1xf32> to vector<1x8x8xf32>
    %21 = arith.mulf %14, %20 : vector<1x8x8xf32>
    %c0_15 = arith.constant 0 : index
    %c0_16 = arith.constant 0 : index
    %c0_17 = arith.constant 0 : index
    %22 = vector.load %arg6[%c0_15, %c0_16, %c0_17] : memref<1x8x8xf32, #tpu.memory_space<vmem>>, vector<1x8x8xf32>
    tpu.vector_store %arg6[%c0_15, %c0_16, %c0_17], %21 {strides = array<i32>} : memref<1x8x8xf32, #tpu.memory_space<vmem>>, vector<1x8x8xf32>,
    "tpu.trace_start"() <{level = 10 : i32, message = "blm,bmd->bld"}> : () -> ()
    %cst_18 = arith.constant dense<0.000000e+00> : vector<1x8x32xf32>
    %23 = tpu.matmul %21, %2, %cst_18 {dimension_numbers = #tpu.dot_dimension_numbers<[2], [1], [1], [2], [0, 0, 0, 1, 1, 2], [0], [0]>} : vector<1x8x8xf32>, vector<1x8x32xf32>, vector<1x8x32xf32> -> vector<1x8x32xf32>
    "tpu.trace_stop"() : () -> ()
    %c0_19 = arith.constant 0 : index
    %c0_20 = arith.constant 0 : index
    %c0_21 = arith.constant 0 : index
    %24 = vector.load %arg5[%c0_19, %c0_20, %c0_21] : memref<1x8x32xf32, #tpu.memory_space<vmem>>, vector<1x8x32xf32>
    tpu.vector_store %arg5[%c0_19, %c0_20, %c0_21], %23 {strides = array<i32>} : memref<1x8x32xf32, #tpu.memory_space<vmem>>, vector<1x8x32xf32>,
    return
  }
  func.func @transform_0(%arg0: i32) -> (i32, i32, i32) {
    %c0_i32 = arith.constant 0 : i32
    %c0_i32_0 = arith.constant 0 : i32
    %c0_i32_1 = arith.constant 0 : i32
    return %arg0, %c0_i32, %c0_i32_0 : i32, i32, i32
  }
  func.func @transform_1(%arg0: i32) -> (i32, i32, i32) {
    %c0_i32 = arith.constant 0 : i32
    %c0_i32_0 = arith.constant 0 : i32
    %c0_i32_1 = arith.constant 0 : i32
    return %arg0, %c0_i32, %c0_i32_0 : i32, i32, i32
  }
  func.func @transform_2(%arg0: i32) -> (i32, i32, i32) {
    %c0_i32 = arith.constant 0 : i32
    %c0_i32_0 = arith.constant 0 : i32
    %c0_i32_1 = arith.constant 0 : i32
    return %arg0, %c0_i32, %c0_i32_0 : i32, i32, i32
  }
  func.func @transform_3(%arg0: i32) -> (i32, i32, i32) {
    %c0_i32 = arith.constant 0 : i32
    %c0_i32_0 = arith.constant 0 : i32
    %c0_i32_1 = arith.constant 0 : i32
    return %arg0, %c0_i32, %c0_i32_0 : i32, i32, i32
  }
  func.func @transform_4(%arg0: i32) -> (i32, i32, i32) {
    %c0_i32 = arith.constant 0 : i32
    %c0_i32_0 = arith.constant 0 : i32
    %c0_i32_1 = arith.constant 0 : i32
    return %arg0, %c0_i32, %c0_i32_0 : i32, i32, i32
  }
  func.func @transform_5(%arg0: i32) -> (i32, i32, i32) {
    %c0_i32 = arith.constant 0 : i32
    %c0_i32_0 = arith.constant 0 : i32
    %c0_i32_1 = arith.constant 0 : i32
    return %arg0, %c0_i32, %c0_i32_0 : i32, i32, i32
  }
}

</mosaic_0001>

<bundles_post_ra>
// kernel: tpu_custom_call.1
= control target key start
LH: loop header
LB: loop body
LE: loop exit
PB: predicated region body
PF: predicated region fallthrough
CT: control target
= control target key end

     0   :  { %s1314_s0 = inlined_call_operand.hbm [shape: f32[2,8,32], index: 0, kind: input, shape index: {}]   ;;  %s1315_s1 = inlined_call_operand.hbm [shape: f32[2,8,32], index: 1, kind: input, shape index: {}]   ;;  %s1316_s2 = inlined_call_operand.hbm [shape: f32[2,8,32], index: 2, kind: input, shape index: {}]   ;;  %s1317_s3 = inlined_call_operand.vmem [shape: s8[2,8,8], index: 3, kind: input, shape index: {}]   ;;  %s1318_s4 = inlined_call_operand.hbm [shape: f32[2,8,32], index: 4, kind: output, shape index: {0}]   ;;  %s1319_s5 = inlined_call_operand.hbm [shape: f32[2,8,8], index: 5, kind: output, shape index: {1}]  }
   0x1   :  { %1325 = sst [smem:[#allocation17_spill]] %s1315_s1 }
   0x2   :  { %11 = vsyncpa [#allocation3], 0 }
   0x3   :  { %13 = vsyncpa [#allocation3 + $0x1], 0 }
   0x4   :  { %14 = vsyncpa [#allocation6], 0 }
   0x5   :  { %16 = vsyncpa [#allocation6 + $0x1], 0 }
   0x6   :  { %17 = vsyncpa [#allocation4], 0 }
   0x7   :  { %19 = vsyncpa [#allocation4 + $0x1], 0 }
   0x8   :  { %20 = vsyncpa [#allocation10], 0 }
   0x9   :  { %22 = vsyncpa [#allocation10 + $0x1], 0  ;;  %s1039_s18 = smov 0   ;;  %s1041_s19 = smov 0  }
   0xa   :  { %s1043_s20 = smov 0   ;;  %s1045_s21 = smov 0  }
   0xb LB: > { %1326 = sst [smem:[#allocation15_spill]] %s996_s20  ;;  %s1060_s22 = sadd.s32 4294967295, %s1000_s21   ;;  %s1000_s21 = sphi %s1045_s21, %s1347_s21   ;;  %s996_s20 = sphi %s1043_s20, %s1344_s20   ;;  %s992_s19 = sphi %s1041_s19, %s1346_s19   ;;  %s988_s18 = sphi %s1039_s18, %s1345_s18  }
   0xc   : > { %s702_s23 = sadd.s32 4294967294, %s1000_s21   ;;  %s1064_s24 = sadd.s32 1, %s1000_s21  }
   0xd   : > { %s35_s25 = sadd.s32 1, %s996_s20  ;;  %s32_s26 = ssub.s32 %s1000_s21, %s1064_s24 }
   0xe   : > { %p42_p0 = scmp.ne.s32.totalorder %s996_s20, %s992_s19  ;;  %p33_p1 = scmp.eq.s32.totalorder %s32_s26, 0 }
   0xf   : > { %p43_p2 = scmp.eq.s32.totalorder %s1000_s21, 0  ;;  %p48_p3 = scmp.ne.s32.totalorder %s992_s19, %s988_s18 }
  0x10   : > { %p49_p4 = scmp.eq.s32.totalorder %s1060_s22, 0  ;;  %p150_p7 = scmp.eq.s32.totalorder %s1060_s22, 1 }
  0x11   : > { %s1076_s27 = scalar_select %p33_p1, %s996_s20, %s35_s25  }
  0x12   : > { %p44_p5 = por %p43_p2, %p42_p0  ;;  %p1078_p6 = por %p49_p4, %p48_p3 }
  0x13   : > { %1327 = sst [smem:[#allocation16_spill]] %s1076_s27  ;;  %p156_p8 = scmp.eq.s32.totalorder %s702_s23, 1 }
  0x14   : > { %s1328_s28 = scalar_select %p1078_p6, 1, 0 }
  0x15   : > { %p768_p10 = scmp.lt.s32.totalorder %s1000_s21, 2  ;;  %p1085_p11 = por %p150_p7, %p42_p0 }
  0x16   : > { %p1089_p12 = por %p156_p8, %p48_p3  ;;  %s202_s6 = sand.u32 1, %s996_s20  }
  0x17   : > { %s1329_s29 = scalar_select %p1085_p11, 1, 0 }
  0x18   : > { %s1330_s30 = scalar_select %p1089_p12, 1, 0 }
  0x19   : > { %s1095_s7 = sshll.u32 %s1000_s21, 7  ;;  %s1099_s8 = sshll.u32 %s202_s6, 3 }
  0x1a   : > { %p1101_p13 = pnand %p768_p10, %p44_p5  ;;  %s220_s10 = sand.u32 1, %s1000_s21  }
  0x1b   : > { %s1332_s1 = sld [smem:[#allocation17_spill]]  ;;  %s224_s14 = scalar_lea.vmem [#allocation5], %s1099_s8 }
  0x1c   : > { %s1331_s9 = scalar_select %p1101_p13, 1, 0 }
  0x1d   : > { %s231_s15 = sshll.u32 %s224_s14, 4  ;;  %s1116_s16 = scalar_lea.sflag [#allocation6], %s220_s10  ;;  %s1113_s15 = int_to_ptr.vmem [resolvable:$true] %s231_s15 }
  0x1e   : > { %p1122_p2 = pneg %p1101_p13 }
  0x21   : > { %s1110_s13 = scalar_lea.hbm %s1332_s1, %s1095_s7  ;;  %s813_s11 = scalar_lea.hbm %s1332_s1, 256 }
  0x22   : > { %s808_s17 = scalar_lea.hbm %s1110_s13, 128  ;;  %p814_p5 = scmp.lt.u32.totalorder %s1110_s13, %s1332_s1 }
  0x23   : > { %p809_p1 = scmp.ne.s32.totalorder %s1110_s13, %s808_s17  ;;  %p815_p7 = scmp.lt.u32.totalorder %s813_s11, %s808_s17 }
  0x24   : > { %p817_p10 = scmp.lt.u32.totalorder %s808_s17, %s1110_s13 }
  0x25   : > { %p811_p3 = pnand %p1122_p2, %p809_p1  ;;  %p816_p8 = por %p815_p7, %p814_p5 }
  0x27   : > { %p812_p4 = pneg %p811_p3  ;;  %p818_p9 = por %p817_p10, %p816_p8 }
  0x29   : > { %p819_p0 = pnand %p818_p9, %p812_p4 }
  0x2b   : > { %822 = shalt.err (!%p819_p0)
}
  0x2c   : > { %s823_s10 = scalar_lea.vmem %s1113_s15, 128  ;;  %s1002_s25 = smov [#allocation5]  }
  0x2d   : > { %p824_p1 = scmp.ne.s32.totalorder %s1113_s15, %s823_s10  ;;  %s828_s26 = sshll.u32 %s1002_s25, 4  ;;  %s829_s26 = int_to_ptr.vmem [resolvable:$false] %s828_s26 }
  0x2e   : > { %s830_s12 = scalar_lea.vmem %s829_s26, 256  ;;  %p831_p11 = scmp.lt.s32.totalorder %s1113_s15, %s829_s26 }
  0x2f   : > { %p826_p3 = pnand %p824_p1, %p1122_p2  ;;  %p832_p6 = scmp.lt.s32.totalorder %s830_s12, %s823_s10 }
  0x31   : > { %p827_p12 = pneg %p826_p3  ;;  %p833_p5 = por %p832_p6, %p831_p11 }
  0x33   : > { %p834_p7 = pnand %p833_p5, %p827_p12 }
  0x35   : > { %837 = shalt.err (!%p834_p7)
}
  0x36   : > { %757 = dma.hbm_to_vmem [thread:$0]  (!%p1101_p13), %s1110_s13, 128, %s1113_s15, %s1116_s16  }
  0x37   : > { %p261_p9 = scmp.lt.s32.totalorder %s1000_s21, 3  ;;  %s1151_s14 = scalar_lea.hbm %s1314_s0, %s1095_s7 }
  0x38   : > { %p1334_p6 = scmp.ge.s32.totalorder %s1000_s21, 1  ;;  %s206_s25 = scalar_lea.vmem [#allocation2], %s1099_s8 }
  0x39   : > { %s213_s26 = sshll.u32 %s206_s25, 4  ;;  %s203_s13 = scalar_lea.sflag [#allocation3], %s202_s6  ;;  %s214_s26 = int_to_ptr.vmem [resolvable:$true] %s213_s26 }
  0x3a   : > { %p1155_p11 = pnand %p1334_p6, %p261_p9  ;;  %s838_s15 = scalar_lea.hbm %s1151_s14, 128 }
  0x3b   : > { %p839_p12 = scmp.ne.s32.totalorder %s1151_s14, %s838_s15  ;;  %s843_s11 = scalar_lea.hbm %s1314_s0, 256 }
  0x3c   : > { %s1335_s10 = scalar_select %p1155_p11, 1, 0 }
  0x3d   : > { %p841_p0 = pnand %p839_p12, %p1122_p2  ;;  %p844_p8 = scmp.lt.u32.totalorder %s1151_s14, %s1314_s0 }
  0x3e   : > { %p845_p10 = scmp.lt.u32.totalorder %s843_s11, %s838_s15  ;;  %p847_p3 = scmp.lt.u32.totalorder %s838_s15, %s1151_s14 }
  0x3f   : > { %p842_p4 = pneg %p841_p0 }
  0x40   : > { %p846_p1 = por %p845_p10, %p844_p8 }
  0x42   : > { %p848_p5 = por %p847_p3, %p846_p1 }
  0x44   : > { %p849_p7 = pnand %p848_p5, %p842_p4 }
  0x46   : > { %852 = shalt.err (!%p849_p7)
}
  0x47   : > { %s853_s6 = scalar_lea.vmem %s214_s26, 128  ;;  %s1003_s25 = smov [#allocation2]  }
  0x48   : > { %p854_p9 = scmp.ne.s32.totalorder %s214_s26, %s853_s6  ;;  %s858_s20 = sshll.u32 %s1003_s25, 4  ;;  %s859_s20 = int_to_ptr.vmem [resolvable:$false] %s858_s20 }
  0x49   : > { %s860_s12 = scalar_lea.vmem %s859_s20, 256  ;;  %p861_p0 = scmp.lt.s32.totalorder %s214_s26, %s859_s20 }
  0x4a   : > { %p856_p6 = pnand %p854_p9, %p1122_p2  ;;  %p862_p11 = scmp.lt.s32.totalorder %s860_s12, %s853_s6 }
  0x4c   : > { %p857_p12 = pneg %p856_p6  ;;  %p863_p13 = por %p862_p11, %p861_p0 }
  0x4e   : > { %p864_p8 = pnand %p863_p13, %p857_p12 }
  0x50   : > { %867 = shalt.err (!%p864_p8)
}
  0x51   : > { %p1336_p10 = scmp.ne.s32.totalorder %s1331_s9, 0  ;;  %s1183_s15 = scalar_lea.hbm %s1316_s2, %s1095_s7 }
  0x52   : > { %s242_s20 = scalar_lea.vmem [#allocation7], %s1099_s8  ;;  %s868_s11 = scalar_lea.hbm %s1183_s15, 128 }
  0x53   : > { %754 = dma.hbm_to_vmem [thread:$0]  (!%p1336_p10), %s1151_s14, 128, %s214_s26, %s203_s13  }
  0x54   : > { %s249_s17 = sshll.u32 %s242_s20, 4  ;;  %p869_p13 = scmp.ne.s32.totalorder %s1183_s15, %s868_s11  ;;  %s250_s17 = int_to_ptr.vmem [resolvable:$true] %s249_s17 }
  0x55   : > { %s873_s14 = scalar_lea.hbm %s1316_s2, 256  ;;  %p874_p1 = scmp.lt.u32.totalorder %s1183_s15, %s1316_s2 }
  0x56   : > { %p871_p11 = pnand %p869_p13, %p1122_p2  ;;  %p875_p3 = scmp.lt.u32.totalorder %s873_s14, %s868_s11 }
  0x57   : > { %p877_p7 = scmp.lt.u32.totalorder %s868_s11, %s1183_s15 }
  0x58   : > { %p872_p4 = pneg %p871_p11  ;;  %p876_p5 = por %p875_p3, %p874_p1 }
  0x5a   : > { %p878_p9 = por %p877_p7, %p876_p5 }
  0x5c   : > { %p879_p6 = pnand %p878_p9, %p872_p4 }
  0x5e   : > { %882 = shalt.err (!%p879_p6)
}
  0x5f   : > { %s883_s7 = scalar_lea.vmem %s250_s17, 128  ;;  %s1004_s8 = smov [#allocation7]  }
  0x60   : > { %p884_p12 = scmp.ne.s32.totalorder %s250_s17, %s883_s7  ;;  %s888_s12 = sshll.u32 %s1004_s8, 4  ;;  %s889_s12 = int_to_ptr.vmem [resolvable:$false] %s888_s12 }
  0x61   : > { %s890_s1 = scalar_lea.vmem %s889_s12, 256  ;;  %p891_p13 = scmp.lt.s32.totalorder %s250_s17, %s889_s12 }
  0x62   : > { %p886_p0 = pnand %p884_p12, %p1122_p2  ;;  %p892_p11 = scmp.lt.s32.totalorder %s890_s1, %s883_s7 }
  0x64   : > { %p887_p8 = pneg %p886_p0  ;;  %p893_p10 = por %p892_p11, %p891_p13 }
  0x66   : > { %p894_p1 = pnand %p893_p10, %p887_p8 }
  0x68   : > { %897 = shalt.err (!%p894_p1)
}
  0x69   : > { %p1337_p3 = scmp.ne.s32.totalorder %s1331_s9, 0  ;;  %p1338_p4 = scmp.ne.s32.totalorder %s1335_s10, 0 }
  0x6a   : > { %s1207_s23 = sand.u32 (!%p1338_p4), 1, %s992_s19   ;;  %p1339_p2 = scmp.ne.s32.totalorder (!%p1338_p4), %s1328_s28, 0 }
  0x6b   : > { %760 = dma.hbm_to_vmem [thread:$0]  (!%p1337_p3), %s1183_s15, 128, %s250_s17, %s1116_s16  }
  0x6c   : > { %265 = sbr.rel (%p1338_p4) target bundleno = 885 (0x375), region = 36  ;;  %s1210_s27 = sshll.u32 (!%p1338_p4), %s1207_s23, 3 }
  0x6d   : > { %s268_s20 = scalar_lea.sflag (!%p1338_p4), [#allocation3], %s1207_s23  ;;  %s271_s11 = scalar_lea.vmem (!%p1338_p4), [#allocation2], %s1210_s27 }
  0x73   : > { %971 = dma.done.wait (%p1339_p2), %s268_s20, 128  }
  0x74   : > { %973 = vsyncadd (%p1339_p2), %s268_s20, 4294967168  ;;  %s276_s9 = sand.u32 1, %s1060_s22   ;;  %s280_s10 = scalar_lea.vmem [#allocation5], %s1210_s27 }
  0x75   : > { %s277_s16 = scalar_lea.sflag [#allocation6], %s276_s9 }
  0x76   : > { %975 = dma.done.wait (%p1339_p2), %s277_s16, 256  }
  0x77   : > { %977 = vsyncadd (%p1339_p2), %s277_s16, 4294967040  ;;  %v1005_v0 = vmov 0.0   ;;  %vm1006_vm0 = vmmov 0   ;;  %vm345_vm1 = vcmask 261120   ;;  %v340_v1 = vld [vmem:[%s280_s10] sm:$0xff]  ;;  %v339_v2 = vld [vmem:[%s271_s11] sm:$0xff] }
  0x78   : > { %731 = vmatprep.subr.mxu0 %v1005_v0  ;;  %733 = vmatprep.mubr.msk.f32.mxu0 %vm1006_vm0, %v1005_v0  ;;  %p335_p10 = scmp.lt.s32.totalorder %s1060_s22, 1  ;;  %vm424_vm2 = vcmask 64512   ;;  %s289_s14 = scalar_lea.vmem [#allocation7], %s1210_s27 }
  0x79   : > { %736 = vmatprep.subr.mxu1 %v1005_v0  ;;  %738 = vmatprep.mubr.msk.f32.mxu1 %vm1006_vm0, %v1005_v0  ;;  %v341_v17 = vld [vmem:[%s289_s14] sm:$0xff]  ;;  %s334_s26 = scalar_lea.vmem [#allocation9], %s1210_s27  ;;  %s723_s13 = sshll.u32 %s1060_s22, 7 }
  0x7a   : > { %732 = vmatpush3.xpose.msk.msra.mxu0 %vm345_vm1, %v340_v1  ;;  %s336_s15 = scalar_select %p335_p10, %s1060_s22, 1  ;;  %737 = vmatpush3.msra.mxu1 %v341_v17 }
  0x7b   : > { %s1243_s12 = scalar_lea.hbm %s1319_s5, %s723_s13  ;;  %s545_s1 = sshll.u32 %s334_s26, 4  ;;  %s546_s1 = int_to_ptr.vmem [resolvable:$true] %s545_s1 }
  0x7c   : > { %s717_s17 = sshll.u32 %s336_s15, 1  ;;  %s519_s20 = scalar_lea.sflag [#allocation10], %s1207_s23 }
  0x7d   : > { %734 = vmatmul.mubr.msk.f32.vlgmr.msra.gmra.mrb[0].mxu0 %vm345_vm1, %v339_v2  ;;  %s338_s25 = scalar_lea.vmem %s1317_s3, %s717_s17  ;;  %s898_s11 = scalar_lea.vmem %s546_s1, 128 }
  0x7e   : > { %v342_v3 = vld [vmem:[%s338_s25] sm:$0x3]  ;;  %p899_p5 = scmp.ne.s32.totalorder %s546_s1, %s898_s11  ;;  %p1340_p7 = scmp.ne.s32.totalorder %s1329_s29, 0 }
  0x7f   : > { %v343_v4 = vunpack.c.0.s8 %v342_v3  ;;  %s1007_s9 = smov [#allocation9]  }
  0x80   : > { %p900_p9 = pnand %p899_p5, %p1340_p7  ;;  %s902_s16 = sshll.u32 %s1007_s9, 4  ;;  %s903_s16 = int_to_ptr.vmem [resolvable:$false] %s902_s16 }
  0x81   : > { %v344_v5 = vcvt.s32.f32 %v343_v4  ;;  %s904_s10 = scalar_lea.vmem %s903_s16, 256  ;;  %p905_p12 = scmp.lt.s32.totalorder %s546_s1, %s903_s16 }
  0x82   : > { %p901_p6 = pneg %p900_p9  ;;  %p906_p0 = scmp.lt.s32.totalorder %s904_s10, %s898_s11 }
  0x84   : > { %p907_p8 = por %p906_p0, %p905_p12 }
  0x86   : > { %p908_p13 = pnand %p907_p8, %p901_p6 }
 0x150   : > { %v418_v6 = vpop.f32.mrb[0].mxu0 }
 0x151   : > { %v422_v7 = vmul.f32 0.17677669, %v418_v6  ;;  %v735_v8 = vpop.f32.mrb[1].mxu0 }
 0x153   : > { %v423_v9 = vmul.f32 %v422_v7, %v344_v5 }
 0x155   : > { %v425_v10 = vsel %vm424_vm2, %v423_v9, -inf }
 0x156   : > { %426 = vmax.xlane.f32.xlu0 %v425_v10 }
 0x1e3   : > { %v427_v11 = vpop.xlane.xlu0 %426 }
 0x1e4   : > { %v428_v12 = vsub.f32 %v423_v9, %v427_v11 }
 0x1e6   : > { %v429_v13 = vmul.f32 1.442695, %v428_v12 }
 0x1e8   : > { %804 = vpow2.f32 %v429_v13 }
 0x1f2   : > { %v805_v14 = vpop.eup %804 }
 0x1f3   : > { %v431_v15 = vmul.f32 %v805_v14, %v344_v5 }
 0x1f5   : > { %v432_v16 = vsel %vm424_vm2, %v431_v15, 0.0 }
 0x1f6   : > { %433 = vadd.xlane.f32.xlu0 %v432_v16 }
 0x283   : > { %v434_v18 = vpop.xlane.xlu0 %433 }
 0x284   : > { %v435_v19 = vadd.f32 1e-13, %v434_v18 }
 0x286   : > { %806 = vrcp.f32 %v435_v19 }
 0x290   : > { %v807_v20 = vpop.eup %806 }
 0x291   : > { %v437_v21 = vmul.f32 %v807_v20, %v431_v15 }
 0x293   : > { %739 = vmatmul.mubr.msk.f32.vlgmr.msra.gmra.mrb[0].mxu1 %vm424_vm2, %v437_v21  ;;  %438 = vst.msk [vmem:[%s334_s26] sm:$0xff] %vm424_vm2, %v437_v21 }
 0x294   : > { %911 = shalt.err (!%p908_p13)
}
 0x295   : > { %s912_s15 = scalar_lea.hbm %s1243_s12, 128  ;;  %s916_s6 = scalar_lea.hbm %s1319_s5, 256 }
 0x296   : > { %p913_p11 = scmp.ne.s32.totalorder %s1243_s12, %s912_s15  ;;  %p917_p4 = scmp.lt.u32.totalorder %s1243_s12, %s1319_s5 }
 0x297   : > { %p918_p2 = scmp.lt.u32.totalorder %s916_s6, %s912_s15  ;;  %p920_p5 = scmp.lt.u32.totalorder %s912_s15, %s1243_s12 }
 0x298   : > { %p914_p1 = pnand %p913_p11, %p1340_p7 }
 0x299   : > { %p919_p10 = por %p918_p2, %p917_p4 }
 0x29a   : > { %p915_p3 = pneg %p914_p1 }
 0x29b   : > { %p921_p9 = por %p920_p5, %p919_p10 }
 0x29d   : > { %p922_p6 = pnand %p921_p9, %p915_p3 }
 0x29f   : > { %925 = shalt.err (!%p922_p6)
}
 0x2a0   : > { %748 = dma.vmem_to_hbm [thread:$0]  (%p1340_p7), %s546_s1, 128, %s1243_s12, %s519_s20  }
 0x2a1   : > { %s327_s26 = scalar_lea.vmem [#allocation8], %s1210_s27  ;;  %s1269_s9 = scalar_lea.hbm %s1318_s4, %s723_s13 }
 0x2a2   : > { %s532_s7 = sshll.u32 %s327_s26, 4  ;;  %s514_s16 = scalar_lea.sflag [#allocation4], %s1207_s23  ;;  %s1271_s7 = int_to_ptr.vmem [resolvable:$true] %s532_s7 }
 0x2a3   : > { %s926_s10 = scalar_lea.vmem %s1271_s7, 128  ;;  %s1008_s22 = smov [#allocation8]  }
 0x2a4   : > { %p927_p12 = scmp.ne.s32.totalorder %s1271_s7, %s926_s10  ;;  %s930_s27 = sshll.u32 %s1008_s22, 4  ;;  %s931_s27 = int_to_ptr.vmem [resolvable:$false] %s930_s27 }
 0x2a5   : > { %s932_s13 = scalar_lea.vmem %s931_s27, 256  ;;  %p933_p13 = scmp.lt.s32.totalorder %s1271_s7, %s931_s27 }
 0x2a6   : > { %p928_p0 = pnand %p927_p12, %p1340_p7  ;;  %p934_p11 = scmp.lt.s32.totalorder %s932_s13, %s926_s10 }
 0x2a8   : > { %p929_p8 = pneg %p928_p0  ;;  %p935_p1 = por %p934_p11, %p933_p13 }
 0x2aa   : > { %p936_p3 = pnand %p935_p1, %p929_p8 }
 0x366   : > { %v508_v22 = vpop.f32.mrb[0].mxu1 }
 0x367   : > { %512 = vst.msk [vmem:[%s327_s26] sm:$0xff] %vm345_vm1, %v508_v22  ;;  %v740_v23 = vpop.f32.mrb[1].mxu1 }
 0x368   : > { %939 = shalt.err (!%p936_p3)
}
 0x369   : > { %s940_s23 = scalar_lea.hbm %s1269_s9, 128  ;;  %s944_s20 = scalar_lea.hbm %s1318_s4, 256 }
 0x36a   : > { %p941_p4 = scmp.ne.s32.totalorder %s1269_s9, %s940_s23  ;;  %p945_p5 = scmp.lt.u32.totalorder %s1269_s9, %s1318_s4 }
 0x36b   : > { %p946_p9 = scmp.lt.u32.totalorder %s944_s20, %s940_s23  ;;  %p948_p12 = scmp.lt.u32.totalorder %s940_s23, %s1269_s9 }
 0x36c   : > { %p942_p2 = pnand %p941_p4, %p1340_p7 }
 0x36d   : > { %p947_p6 = por %p946_p9, %p945_p5 }
 0x36e   : > { %p943_p10 = pneg %p942_p2 }
 0x36f   : > { %p949_p0 = por %p948_p12, %p947_p6 }
 0x371   : > { %p950_p8 = pnand %p949_p0, %p943_p10 }
 0x373   : > { %953 = shalt.err (!%p950_p8)
}
 0x374   : > { %747 = dma.vmem_to_hbm [thread:$0]  (%p1340_p7), %s1271_s7, 128, %s1269_s9, %s514_s16  }
 0x375 PF: > { %s557_s28 = sand.u32 1, %s988_s18   ;;  %p1341_p13 = scmp.ne.s32.totalorder %s1330_s30, 0 }
 0x376   : > { %p1342_p11 = scmp.ge.s32.totalorder %s1000_s21, 2  ;;  %s558_s6 = scalar_lea.sflag [#allocation4], %s557_s28 }
 0x378   : > { %p762_p1 = pnand %p1342_p11, %p1341_p13 }
 0x37a   : > { %979 = dma.done.wait (!%p762_p1), %s558_s6, 128  }
 0x37b   : > { %981 = vsyncadd (!%p762_p1), %s558_s6, 4294967168  ;;  %s567_s25 = scalar_lea.sflag [#allocation10], %s557_s28 }
 0x37c   : > { %983 = dma.done.wait (!%p762_p1), %s567_s25, 128  }
 0x37d   : > { %985 = vsyncadd (!%p762_p1), %s567_s25, 4294967168  ;;  %s1343_s29 = sld [smem:[#allocation15_spill]]  ;;  %s1344_s20 = sld [smem:[#allocation16_spill]] }
 0x37e   : > { %p25_p7 = scmp.ge.s32.totalorder %s1064_s24, 4   ;;  %s1345_s18 = smov %s992_s19 }
 0x37f   : > { %s1347_s21 = smov %s1064_s24 }
 0x380   :  { %27 = sbr.rel (!%p25_p7) target bundleno = 11 (0xb), region = 125 }
 0x383   : > { %s1346_s19 = smov %s1343_s29 }
 0x387   :  { %572 = vsyncpa [#allocation3], 1 }
 0x388   :  { %574 = vsyncpa [#allocation3 + $0x1], 1 }
 0x389   :  { %575 = vsyncpa [#allocation6], 1 }
 0x38a   :  { %577 = vsyncpa [#allocation6 + $0x1], 1 }
 0x38b   :  { %578 = vsyncpa [#allocation4], 1 }
 0x38c   :  { %580 = vsyncpa [#allocation4 + $0x1], 1 }
 0x38d   :  { %581 = vsyncpa [#allocation10], 1 }
 0x38e   :  { %583 = vsyncpa [#allocation10 + $0x1], 1 }

</bundles_post_ra>
